<compile_context>
chip_gen: v7x
topology: tpu7x:2x2x1
jax: 0.10.0
libtpu: 0.0.40
codegen_flags: <defaults>
</compile_context>

<pallas_src>
import math

import jax
import jax.numpy as jnp
from jax.experimental import pallas as pl
from jax.experimental.pallas import tpu as pltpu


def _round_up(x: int, m: int) -> int:
    return ((x + m - 1) // m) * m


# ---------------------------------------------------------------------------
# Kernels
# ---------------------------------------------------------------------------

def _gem_pool_kernel(scalars_ref, x_ref, kt_ref, o_ref):
    # scalars_ref: SMEM (2,) f32    : [p, eps]
    # x_ref      : VMEM (T, H*W)    : input tile (T rows of flattened N*C), native dtype
    # kt_ref     : VMEM (H*W, OH*OW): resident Kron pooling weights K^T (f32)
    # o_ref      : VMEM (T, OH*OW)  : f32 output tile
    p = scalars_ref[0]
    eps = scalars_ref[1]
    inv_p = 1.0 / p  # NOTE: p == 0 is undefined for GeM (same as the PyTorch module).

    x = jnp.maximum(x_ref[...].astype(jnp.float32), eps)
    # x >= eps > 0, so pow(x, p) == exp(p * log(x)) exactly (EUP transcendentals).
    xp = jnp.exp(p * jnp.log(x))                                      # (T, HW)
    # Dense Kron adaptive-avg-pool: single MXU matmul, contraction length H*W.
    z = jnp.dot(xp, kt_ref[...], preferred_element_type=jnp.float32)  # (T, OO)
    # pooled > 0 -> take the 1/p root.
    o_ref[...] = jnp.exp(jnp.log(z) * inv_p)


def _gem_global_pool_kernel(scalars_ref, x_ref, o_ref):
    # Special case OH == OW == 1: lane reduction instead of the matmul.
    p = scalars_ref[0]
    eps = scalars_ref[1]
    inv_p = 1.0 / p
    hw = x_ref.shape[1]

    x = jnp.maximum(x_ref[...].astype(jnp.float32), eps)
    xp = jnp.exp(p * jnp.log(x))
    z = jnp.sum(xp, axis=-1, keepdims=True) * (1.0 / hw)              # (T, 1)
    o_ref[...] = jnp.exp(jnp.log(z) * inv_p)


# ---------------------------------------------------------------------------
# Wrapper helpers
# ---------------------------------------------------------------------------

def _adaptive_pool_matrix(in_size: int, out_size: int) -> jnp.ndarray:
    """M[o, i] = 1/count if i is in adaptive bin o (PyTorch rule) else 0."""
    rows = []
    for o in range(out_size):
        start = (o * in_size) // out_size
        end = math.ceil((o + 1) * in_size / out_size)
        cnt = end - start
        row = [0.0] * in_size
        for i in range(start, end):
            row[i] = 1.0 / cnt
        rows.append(row)
    return jnp.asarray(rows, dtype=jnp.float32)


def _pick_tile_nc(NC, HW, OO, in_bytes, *,
                  vmem_budget_bytes=24 * 1024 * 1024, max_tile=1024):
    """Rows per grid step, sized against lane-padded VMEM footprints."""
    sublane = max(8, 32 // in_bytes)          # f32 -> 8, bf16 -> 16, int8 -> 32
    HW_pad = _round_up(HW, 128)
    OO_pad = _round_up(OO, 128)
    # f32 bytes per row of the NC axis (lane-padded):
    #   2x double-buffered input block (native dtype)
    # + ~3 f32 temps for the clamp/log/exp chain over HW
    # + 2x double-buffered f32 output block.
    per_row = 2 * HW_pad * in_bytes + 3 * HW_pad * 4 + 2 * OO_pad * 4
    tile = max(1, vmem_budget_bytes // per_row)
    tile = min(tile, max_tile, NC)
    # Megacore / pipelining: keep >= ~4 grid steps when NC is large enough so
    # both v7x TensorCores get work and the BlockSpec pipeline can overlap DMA.
    if NC >= 4 * sublane:
        tile = min(tile, _round_up(-(-NC // 4), sublane))
    if tile >= sublane:
        tile = (tile // sublane) * sublane
    return max(min(tile, NC), 1)


def adaptive_generalized_avg_pool2d(x, p, output_size, eps=1e-6, max_tile_nc=1024):
    """x: (N, C, H, W); p: scalar; returns (N, C, OH, OW) f32. Matches the PyTorch forward."""
    N, C, H, W = x.shape
    if isinstance(output_size, int):
        OH = OW = output_size
    else:
        OH, OW = output_size

    HW = H * W
    OO = OH * OW
    NC = N * C

    # Lane-dense, native-dtype view of the input (cast to f32 happens in-kernel).
    x2 = x.reshape(NC, HW)
    in_bytes = x2.dtype.itemsize

    tile = _pick_tile_nc(NC, HW, OO, in_bytes, max_tile=max_tile_nc)
    n_steps = -(-NC // tile)
    NC_pad = n_steps * tile
    if NC_pad != NC:
        # Pad with 1.0 so padded rows stay finite through log/exp; they are
        # sliced off below and never alias real output rows.
        x2 = jnp.pad(x2, ((0, NC_pad - NC), (0, 0)), constant_values=1.0)

    scalars = jnp.stack([jnp.asarray(p, jnp.float32),
                         jnp.asarray(eps, jnp.float32)])

    compiler_params = pltpu.CompilerParams(
        dimension_semantics=("parallel",),     # megacore sharding on v7x
        vmem_limit_bytes=48 * 1024 * 1024,     # < 64 MiB physical on v7x, > v5e default
    )

    if OO == 1:
        # Classic GeM global pooling: no pooling-weight matmul needed.
        out = pl.pallas_call(
            _gem_global_pool_kernel,
            out_shape=jax.ShapeDtypeStruct((NC_pad, 1), jnp.float32),
            grid_spec=pltpu.PrefetchScalarGridSpec(
                num_scalar_prefetch=0,
                grid=(n_steps,),
                in_specs=[
                    pl.BlockSpec(memory_space=pltpu.SMEM),            # [p, eps]
                    pl.BlockSpec((tile, HW), lambda i: (i, 0)),       # x tile (pipelined)
                ],
                out_specs=pl.BlockSpec((tile, 1), lambda i: (i, 0)),
            ),
            compiler_params=compiler_params,
        )(scalars, x2)
    else:
        # Resident Kron pooling operator: K = kron(A, B), pooled = xp @ K^T.
        A = _adaptive_pool_matrix(H, OH)                   # (OH, H)
        B = _adaptive_pool_matrix(W, OW)                   # (OW, W)
        Kt = jnp.kron(A, B).T                              # (HW, OO), f32
        out = pl.pallas_call(
            _gem_pool_kernel,
            out_shape=jax.ShapeDtypeStruct((NC_pad, OO), jnp.float32),
            grid_spec=pltpu.PrefetchScalarGridSpec(
                num_scalar_prefetch=0,
                grid=(n_steps,),
                in_specs=[
                    pl.BlockSpec(memory_space=pltpu.SMEM),            # [p, eps]
                    pl.BlockSpec((tile, HW), lambda i: (i, 0)),       # x tile (pipelined)
                    pl.BlockSpec((HW, OO), lambda i: (0, 0)),         # K^T (resident)
                ],
                out_specs=pl.BlockSpec((tile, OO), lambda i: (i, 0)),
            ),
            compiler_params=compiler_params,
        )(scalars, x2, Kt)

    if NC_pad != NC:
        out = out[:NC]
    return out.reshape(N, C, OH, OW)


# ---------------------------------------------------------------------------
# Pure-JAX reference (mirrors the PyTorch forward)
# ---------------------------------------------------------------------------

def _reference(x, p, output_size, eps=1e-6):
    N, C, H, W = x.shape
    if isinstance(output_size, int):
        OH = OW = output_size
    else:
        OH, OW = output_size
    xp = jnp.maximum(x.astype(jnp.float32), eps) ** p
    A = _adaptive_pool_matrix(H, OH)
    B = _adaptive_pool_matrix(W, OW)
    pooled = jnp.einsum('oh,nchw,pw->ncop', A, xp, B)
    return pooled ** (1.0 / p)


if __name__ == "__main__":
    key = jax.random.PRNGKey(0)
    N, C, H, W = 2, 4, 16, 16
    p = jnp.float32(3.0)  # deterministic init: nn.Parameter(torch.tensor(3.0))

    x = jax.random.normal(key, (N, C, H, W), dtype=jnp.float32)

    # 1) Matmul (Kron) path, single grid step.
    out = adaptive_generalized_avg_pool2d(x, p, (2, 2))
    out = jax.block_until_ready(out)
    ref = _reference(x, p, (2, 2))
    assert out.shape == (N, C, 2, 2)
    assert jnp.allclose(out, ref, atol=1e-4, rtol=1e-4)

    # 2) Multi-step grid + row padding (NC=12, tile=8 -> pad to 16, grid=(2,))
    #    and overlapping adaptive bins (16 -> 3).
    N2, C2 = 3, 4
    x2 = jax.random.normal(jax.random.PRNGKey(1), (N2, C2, H, W), dtype=jnp.float32)
    out2 = adaptive_generalized_avg_pool2d(x2, p, (3, 3), max_tile_nc=8)
    out2 = jax.block_until_ready(out2)
    ref2 = _reference(x2, p, (3, 3))
    assert out2.shape == (N2, C2, 3, 3)
    assert jnp.allclose(out2, ref2, atol=1e-4, rtol=1e-4)

    # 3) Global-pool special case (OH = OW = 1): reduction path, no weights.
    out3 = adaptive_generalized_avg_pool2d(x, p, 1)
    out3 = jax.block_until_ready(out3)
    ref3 = _reference(x, p, 1)
    assert out3.shape == (N, C, 1, 1)
    assert jnp.allclose(out3, ref3, atol=1e-4, rtol=1e-4)

    print("KERNEL_OK")
</pallas_src>

<mosaic_0001>
module attributes {stable_mosaic.version = 11 : i64} {
  func.func @_gem_pool_kernel(%arg0: i32, %arg1: memref<2xf32, #tpu.memory_space<smem>>, %arg2: memref<8x256xf32, #tpu.memory_space<vmem>>, %arg3: memref<256x4xf32, #tpu.memory_space<vmem>>, %arg4: memref<8x4xf32, #tpu.memory_space<vmem>>) attributes {dimension_semantics = [#tpu.dimension_semantics<parallel>], iteration_bounds = array<i64: 1>, scalar_prefetch = 0 : i64, scratch_operands = 0 : i64, tpu.core_type = #tpu.core_type<tc>, window_params = [{transform_indices = @transform_0, window_bounds = array<i64: 2>}, {transform_indices = @transform_1, window_bounds = array<i64: 8, 256>}, {pipeline_mode = #tpu.pipeline_mode<synchronous>, transform_indices = @transform_2, window_bounds = array<i64: 256, 4>}, {transform_indices = @transform_3, window_bounds = array<i64: 8, 4>}]} {
    %c0 = arith.constant 0 : index
    %0 = memref.load %arg1[%c0] : memref<2xf32, #tpu.memory_space<smem>>
    %c1 = arith.constant 1 : index
    %1 = memref.load %arg1[%c1] : memref<2xf32, #tpu.memory_space<smem>>
    %cst = arith.constant 1.000000e+00 : f32
    %2 = arith.divf %cst, %0 : f32
    %c0_0 = arith.constant 0 : index
    %c0_1 = arith.constant 0 : index
    %3 = vector.load %arg2[%c0_0, %c0_1] : memref<8x256xf32, #tpu.memory_space<vmem>>, vector<8x256xf32>
    %4 = vector.broadcast %1 : f32 to vector<8x256xf32>
    %5 = arith.maximumf %3, %4 : vector<8x256xf32>
    %6 = math.log %5 : vector<8x256xf32>
    %7 = vector.broadcast %0 : f32 to vector<8x256xf32>
    %8 = arith.mulf %7, %6 : vector<8x256xf32>
    %9 = math.exp %8 : vector<8x256xf32>
    %c0_2 = arith.constant 0 : index
    %c0_3 = arith.constant 0 : index
    %10 = vector.load %arg3[%c0_2, %c0_3] : memref<256x4xf32, #tpu.memory_space<vmem>>, vector<256x4xf32>
    %cst_4 = arith.constant dense<0.000000e+00> : vector<8x4xf32>
    %11 = tpu.matmul %9, %10, %cst_4 {dimension_numbers = #tpu.dot_dimension_numbers<[1], [0], [0], [1], [0, 0, 1, 1], [], []>} : vector<8x256xf32>, vector<256x4xf32>, vector<8x4xf32> -> vector<8x4xf32>
    %12 = math.log %11 : vector<8x4xf32>
    %13 = vector.broadcast %2 : f32 to vector<8x4xf32>
    %14 = arith.mulf %12, %13 : vector<8x4xf32>
    %15 = math.exp %14 : vector<8x4xf32>
    %c0_5 = arith.constant 0 : index
    %c0_6 = arith.constant 0 : index
    %16 = vector.load %arg4[%c0_5, %c0_6] : memref<8x4xf32, #tpu.memory_space<vmem>>, vector<8x4xf32>
    tpu.vector_store %arg4[%c0_5, %c0_6], %15 {strides = array<i32>} : memref<8x4xf32, #tpu.memory_space<vmem>>, vector<8x4xf32>,
    return
  }
  func.func @transform_0(%arg0: i32) -> i32 {
    %c0_i32 = arith.constant 0 : i32
    %c0_i32_0 = arith.constant 0 : i32
    return %c0_i32 : i32
  }
  func.func @transform_1(%arg0: i32) -> (i32, i32) {
    %c0_i32 = arith.constant 0 : i32
    %c0_i32_0 = arith.constant 0 : i32
    return %arg0, %c0_i32 : i32, i32
  }
  func.func @transform_2(%arg0: i32) -> (i32, i32) {
    %c0_i32 = arith.constant 0 : i32
    %c0_i32_0 = arith.constant 0 : i32
    %c0_i32_1 = arith.constant 0 : i32
    return %c0_i32, %c0_i32_0 : i32, i32
  }
  func.func @transform_3(%arg0: i32) -> (i32, i32) {
    %c0_i32 = arith.constant 0 : i32
    %c0_i32_0 = arith.constant 0 : i32
    return %arg0, %c0_i32 : i32, i32
  }
}

</mosaic_0001>

<bundles_post_ra>
// kernel: tpu_custom_call.1
= control target key start
LH: loop header
LB: loop body
LE: loop exit
PB: predicated region body
PF: predicated region fallthrough
CT: control target
= control target key end

     0   :  { %8 = vsyncpa [#allocation3], 0  ;;  %s394_s0 = inlined_call_operand.vmem [shape: f32[2], index: 0, kind: input, shape index: {}]   ;;  %s395_s1 = inlined_call_operand.vmem [shape: f32[8,256], index: 1, kind: input, shape index: {}]   ;;  %s396_s2 = inlined_call_operand.vmem [shape: f32[256,4], index: 2, kind: input, shape index: {}]   ;;  %s397_s3 = inlined_call_operand.vmem [shape: f32[8,4], index: 3, kind: output, shape index: {}]  }
   0x1   :  { %s15_s14 = sshll.u32 %s394_s0, 4  ;;  %s16_s14 = int_to_ptr.vmem [resolvable:$true] %s15_s14 }
   0x2   :  { %s248_s15 = scalar_lea.vmem %s16_s14, 16  ;;  %p253_p1 = scmp.lt.s32.totalorder %s16_s14, %s16_s14 }
   0x3   :  { %p249_p0 = scmp.ne.s32.totalorder %s16_s14, %s248_s15  ;;  %p254_p2 = scmp.lt.s32.totalorder %s248_s15, %s248_s15 }
   0x5   :  { %p255_p3 = por %p254_p2, %p253_p1 }
   0x7   :  { %p256_p4 = pnand %p255_p3, %p249_p0 }
   0x9   :  { %259 = shalt.err (!%p256_p4)
}
   0xa   :  { %s262_s16 = smov [#allocation2]  }
   0xb   :  { %18 = dma.vmem_to_smem %s16_s14, 16, %s262_s16, [#allocation3]  }
   0xc   :  { %260 = dma.done.wait [#allocation3], 16  }
   0xd   :  { %261 = vsyncadd [#allocation3], 4294967280 }
   0xe   :  { %26 = sfence }
   0xf   :  { %v64_v0 = vld [vmem:[%s396_s2 + $0x80] sm:$0xff]  ;;  %v65_v1 = vld [vmem:[%s396_s2 + $0x88] sm:$0xff]  ;;  %s27_s22 = sld [smem:[#allocation2]]  ;;  %v66_v5 = vld [vmem:[%s396_s2 + $0x90] sm:$0xff]  ;;  %s304_s29 = sld [smem:[#allocation2 + $0x1]]  ;;  %vm156_vm0 = vcmask 31744  }
  0x10   :  { %v48_v2 = vld [vmem:[%s396_s2] sm:$0xff]  ;;  %v199_v3 = vpack.c.bf16 %v65_v1, %v64_v0  ;;  %v49_v4 = vld [vmem:[%s396_s2 + $0x8] sm:$0xff]  ;;  %v67_v6 = vld [vmem:[%s396_s2 + $0x98] sm:$0xff] }
  0x11   :  { %v201_v7 = vpack.c.bf16 %v49_v4, %v48_v2  ;;  %v203_v8 = vpack.c.bf16 %v67_v6, %v66_v5  ;;  %v50_v9 = vld [vmem:[%s396_s2 + $0x10] sm:$0xff]  ;;  %v51_v10 = vld [vmem:[%s396_s2 + $0x18] sm:$0xff]  ;;  %v68_v11 = vld [vmem:[%s396_s2 + $0xa0] sm:$0xff] }
  0x12   :  { %200 = vmatprep.subr.bf16.mxu0 %v199_v3  ;;  %v69_v12 = vld [vmem:[%s396_s2 + $0xa8] sm:$0xff]  ;;  %v205_v13 = vpack.c.bf16 %v51_v10, %v50_v9  ;;  %v52_v15 = vld [vmem:[%s396_s2 + $0x20] sm:$0xff]  ;;  %v70_v17 = vld [vmem:[%s396_s2 + $0xb0] sm:$0xff] }
  0x13   :  { %202 = vmatpush3.bf16.msra.mxu0 %v201_v7  ;;  %v207_v14 = vpack.c.bf16 %v69_v12, %v68_v11  ;;  %v53_v16 = vld [vmem:[%s396_s2 + $0x28] sm:$0xff]  ;;  %v71_v18 = vld [vmem:[%s396_s2 + $0xb8] sm:$0xff]  ;;  %v54_v23 = vld [vmem:[%s396_s2 + $0x30] sm:$0xff] }
  0x14   :  { %204 = vmatprep.subr.bf16.mxu0 %v203_v8  ;;  %v209_v20 = vpack.c.bf16 %v53_v16, %v52_v15  ;;  %v211_v22 = vpack.c.bf16 %v71_v18, %v70_v17  ;;  %v55_v24 = vld [vmem:[%s396_s2 + $0x38] sm:$0xff]  ;;  %v72_v25 = vld [vmem:[%s396_s2 + $0xc0] sm:$0xff]  ;;  %v73_v26 = vld [vmem:[%s396_s2 + $0xc8] sm:$0xff] }
  0x15   :  { %v29_v19 = vstv %s27_s22  ;;  %v34_v21 = vstv %s304_s29  ;;  %v32_v27 = vld [vmem:[%s395_s1] sm:$0xff]  ;;  %v33_v28 = vld [vmem:[%s395_s1 + $0x8] sm:$0xff]  ;;  %v213_v30 = vpack.c.bf16 %v55_v24, %v54_v23  ;;  %v215_v32 = vpack.c.bf16 %v73_v26, %v72_v25 }
  0x16   :  { %234 = vrcp.f32 %v29_v19  ;;  %v35_v29 = vmax.f32 %v32_v27, %v34_v21  ;;  %v36_v31 = vmax.f32 %v33_v28, %v34_v21  ;;  %v56_v33 = vld [vmem:[%s396_s2 + $0x40] sm:$0xff]  ;;  %v57_v34 = vld [vmem:[%s396_s2 + $0x48] sm:$0xff]  ;;  %v74_v35 = vld [vmem:[%s396_s2 + $0xd0] sm:$0xff] }
  0x17   :  { %206 = vmatpush3.bf16.msra.mxu0 %v205_v13  ;;  %v75_v36 = vld [vmem:[%s396_s2 + $0xd8] sm:$0xff]  ;;  %v217_v37 = vpack.c.bf16 %v57_v34, %v56_v33  ;;  %v58_v40 = vld [vmem:[%s396_s2 + $0x50] sm:$0xff]  ;;  %v76_v42 = vld [vmem:[%s396_s2 + $0xe0] sm:$0xff] }
  0x18   :  { %208 = vmatprep.subr.bf16.mxu0 %v207_v14  ;;  %236 = vlog2.f32 %v35_v29  ;;  %v219_v39 = vpack.c.bf16 %v75_v36, %v74_v35  ;;  %v59_v41 = vld [vmem:[%s396_s2 + $0x58] sm:$0xff]  ;;  %v77_v43 = vld [vmem:[%s396_s2 + $0xe8] sm:$0xff]  ;;  %v60_v46 = vld [vmem:[%s396_s2 + $0x60] sm:$0xff] }
  0x19   :  { %238 = vlog2.f32 %v36_v31  ;;  %v221_v44 = vpack.c.bf16 %v59_v41, %v58_v40  ;;  %v223_v45 = vpack.c.bf16 %v77_v43, %v76_v42  ;;  %v61_v47 = vld [vmem:[%s396_s2 + $0x68] sm:$0xff]  ;;  %v78_v48 = vld [vmem:[%s396_s2 + $0xf0] sm:$0xff]  ;;  %v79_v49 = vld [vmem:[%s396_s2 + $0xf8] sm:$0xff] }
  0x1a   :  { %v225_v52 = vpack.c.bf16 %v61_v47, %v60_v46  ;;  %v227_v54 = vpack.c.bf16 %v79_v49, %v78_v48  ;;  %v62_v55 = vld [vmem:[%s396_s2 + $0x70] sm:$0xff]  ;;  %v63_v56 = vld [vmem:[%s396_s2 + $0x78] sm:$0xff] }
  0x1b   :  { %210 = vmatpush3.bf16.msra.mxu0 %v209_v20  ;;  %v229_v60 = vpack.c.bf16 %v63_v56, %v62_v55 }
  0x1c   :  { %212 = vmatprep.subr.bf16.mxu0 %v211_v22 }
  0x1f   :  { %214 = vmatpush3.bf16.msra.mxu0 %v213_v30 }
  0x20   :  { %v235_v38 = vpop.eup %234  ;;  %216 = vmatprep.subr.bf16.mxu0 %v215_v32 }
  0x21   :  { %231 = vpush %v235_v38 }
  0x22   :  { %v237_v50 = vpop.eup %236 }
  0x23   :  { %218 = vmatpush3.bf16.msra.mxu0 %v217_v37  ;;  %v239_v51 = vpop.eup %238  ;;  %v38_v53 = vmul.f32 0.6931472, %v237_v50 }
  0x24   :  { %220 = vmatprep.subr.bf16.mxu0 %v219_v39  ;;  %v40_v57 = vmul.f32 0.6931472, %v239_v51 }
  0x25   :  { %v42_v58 = vmul.f32 %v38_v53, %v29_v19 }
  0x26   :  { %v43_v59 = vmul.f32 %v40_v57, %v29_v19 }
  0x27   :  { %222 = vmatpush3.bf16.msra.mxu0 %v221_v44  ;;  %v44_v61 = vmul.f32 1.442695, %v42_v58 }
  0x28   :  { %224 = vmatprep.subr.bf16.mxu0 %v223_v45  ;;  %v46_v62 = vmul.f32 1.442695, %v43_v59 }
  0x29   :  { %240 = vpow2.f32 %v44_v61 }
  0x2a   :  { %242 = vpow2.f32 %v46_v62 }
  0x2b   :  { %226 = vmatpush3.bf16.msra.mxu0 %v225_v52 }
  0x2c   :  { %228 = vmatprep.subr.bf16.mxu0 %v227_v54 }
  0x2f   :  { %230 = vmatpush3.bf16.msra.mxu0 %v229_v60 }
  0x33   :  { %v241_v63 = vpop.eup %240 }
  0x34   :  { %v243_v0 = vpop.eup %242 }
  0x35   :  { %144 = vmatprep.mubr.f32.mxu0 %v243_v0 }
  0x36   :  { %145 = vmatmul.mubr.f32.vlgmr.msra.gmra.mrb[0].mxu0 %v241_v63 }
  0x52   :  { %s232_s2 = spop %231 }
  0x53   :  { %v152_v5 = vstv %s232_s2 }
 0x109   :  { %v196_v1 = vpop.f32.mrb[0].mxu0 }
 0x10a   :  { %v197_v2 = vpop.f32.mrb[1].mxu0 }
 0x10b   :  { %v198_v3 = vadd.f32 %v197_v2, %v196_v1 }
 0x10d   :  { %244 = vlog2.f32 %v198_v3 }
 0x117   :  { %v245_v4 = vpop.eup %244 }
 0x118   :  { %v151_v6 = vmul.f32 0.6931472, %v245_v4 }
 0x11a   :  { %v153_v7 = vmul.f32 %v152_v5, %v151_v6 }
 0x11c   :  { %v154_v8 = vmul.f32 1.442695, %v153_v7 }
 0x11e   :  { %246 = vpow2.f32 %v154_v8 }
 0x128   :  { %v247_v9 = vpop.eup %246 }
 0x129   :  { %157 = vst.msk [vmem:[%s397_s3] sm:$0xff] %vm156_vm0, %v247_v9 }
 0x12a   :  { %162 = vsyncpa [#allocation3], 1 }

</bundles_post_ra>
